<compile_context>
chip_gen: v7x
topology: tpu7x:2x2x1
jax: 0.10.0
libtpu: 0.0.40
codegen_flags: <defaults>
</compile_context>

<pallas_src>
import functools

import numpy as np
import jax
import jax.numpy as jnp
from jax.experimental import pallas as pl
from jax.experimental.pallas import tpu as pltpu

_MIB = 1024 * 1024


def _vq_train_kernel(x_ref, embed_t_ref, embed_ref, esq_ref,
                     q_ref, ind_ref, sse_ref, bins_ref, esum_ref, *,
                     n_valid, tile, tiles_per_split, apply_mask, compute_dtype):
    """Per token-tile: nearest code, gather, EMA stats, commitment SSE, rotation."""
    t = pl.program_id(1)                          # "arbitrary" token-tile axis

    @pl.when(t == 0)
    def _():
        sse_ref[...] = jnp.zeros_like(sse_ref)
        bins_ref[...] = jnp.zeros_like(bins_ref)
        esum_ref[...] = jnp.zeros_like(esum_ref)

    x_in = x_ref[...]                                              # (TN, D) incoming dtype
    is_f32_compute = np.dtype(compute_dtype) == np.dtype(jnp.float32)
    xc = x_in if x_in.dtype == np.dtype(compute_dtype) else x_in.astype(compute_dtype)
    x = x_in if x_in.dtype == np.dtype(jnp.float32) else x_in.astype(jnp.float32)
    tn, d = x.shape
    k = embed_ref.shape[0]

    # ---- nearest-code search ----
    # argmax_k -(||x||^2 - 2 x.e_k + ||e_k||^2) == argmax_k (2 x.e_k - ||e_k||^2):
    # the per-row ||x||^2 constant is dropped (argmax invariant).  embed_t_ref is
    # the codebook pre-cast + pre-transposed to (D,K) by the wrapper, so no
    # per-tile cast / transpose runs in the body.
    xe = jnp.dot(xc, embed_t_ref[...], preferred_element_type=jnp.float32)  # (TN,K) MXU
    score = 2.0 * xe - esq_ref[...]                                # (1,K) broadcast, VPU
    max_s = jnp.max(score, axis=-1, keepdims=True)                 # (TN,1)
    iota_row = jax.lax.broadcasted_iota(jnp.int32, (1, k), 1)      # (1,K), no (TN,K) iota
    ind2d = jnp.min(jnp.where(score == max_s, iota_row, k),
                    axis=-1, keepdims=True)                        # (TN,1) first-max tiebreak

    onehot_b = iota_row == ind2d                                   # (TN,K) bool
    if apply_mask:   # compiled in only when the token count was padded
        gtile = pl.program_id(0) * tiles_per_split + t
        row_idx = jax.lax.broadcasted_iota(jnp.int32, (tn, 1), 0) + gtile * tile
        valid_b = row_idx < n_valid                                # (TN,1) bool
        onehot_b = jnp.logical_and(onehot_b, valid_b)

    if is_f32_compute:
        onehot_c = onehot_b.astype(jnp.float32)
        bins_inc = jnp.sum(onehot_c, axis=0, keepdims=True)        # (1,K) VPU/XLU
    else:
        # keep (TN,K) elementwise work out of bf16 (v5e has no bf16 VPU); count
        # bins with a tiny f32-accumulated MXU matmul instead of a f32 cast pass.
        onehot_c = onehot_b.astype(compute_dtype)
        ones_row = jnp.ones((1, tn), compute_dtype)
        bins_inc = jnp.dot(ones_row, onehot_c, preferred_element_type=jnp.float32)

    # gather code vectors (== F.embedding(ind, embed)) via one-hot matmul
    quantize = jnp.dot(onehot_c, embed_ref[...],
                       preferred_element_type=jnp.float32)         # (TN,D) MXU

    # ---- commitment SSE and EMA statistics ----
    diff = quantize - x
    row_sse = jnp.sum(diff * diff, axis=-1, keepdims=True)         # (TN,1)
    if apply_mask:
        row_sse = jnp.where(valid_b, row_sse, 0.0)
    sse_ref[...] += jnp.sum(row_sse, keepdims=True)                # (1,1)
    bins_ref[...] += bins_inc                                      # (1,K)
    # embed_sum = x^T @ onehot over the token axis -> (D,K).  The (D,K) layout is
    # kept (rather than (K,D)) so the small (TN,D) x tile, not the (TN,K) onehot,
    # is the operand that gets relaid for the ((0,),(0,)) contraction.
    esum_ref[...] += jax.lax.dot_general(
        xc, onehot_c, dimension_numbers=(((0,), (0,)), ((), ())),
        preferred_element_type=jnp.float32)                        # (D,K) MXU

    # ---- rotation trick (per-row reflection transform), f32 VPU math ----
    eps = 1e-10
    x_sq = jnp.sum(x * x, axis=-1, keepdims=True)
    x_norm = jnp.sqrt(x_sq)
    inv_xn = 1.0 / (x_norm + eps)
    q_sq = jnp.sum(quantize * quantize, axis=-1, keepdims=True)
    q_norm = jnp.sqrt(q_sq)
    u = x * inv_xn
    qn = quantize * (1.0 / (q_norm + eps))
    w_un = u + qn
    w = w_un * jax.lax.rsqrt(jnp.sum(w_un * w_un, axis=-1, keepdims=True))
    xw = jnp.sum(x * w, axis=-1, keepdims=True)
    xu = x_sq * inv_xn                        # == sum(x * u), analytically
    rot = x - 2.0 * xw * w + 2.0 * xu * qn
    q_out = rot * (q_norm * inv_xn)

    if apply_mask:  # keep padded (all-zero) rows finite; they are sliced off later
        q_out = jnp.where(valid_b, q_out, 0.0)
        ind2d = jnp.where(valid_b, ind2d, 0)

    q_ref[...] = q_out.astype(q_ref.dtype)
    ind_ref[...] = ind2d


def _tpu_hw_params():
    """(vmem_capacity_bytes, tensorcores_per_device) — generation aware, defensive."""
    kind = ""
    try:
        kind = jax.devices()[0].device_kind.lower()
    except Exception:
        pass
    vmem_cap = None
    try:
        vmem_cap = int(getattr(pltpu.get_tpu_info(), "vmem_capacity_bytes", 0)) or None
    except Exception:
        vmem_cap = None
    if vmem_cap is None:
        vmem_cap = 64 * _MIB if "v7" in kind else 128 * _MIB
    multi_tc = ("v7" in kind) or ("v4" in kind) or ("v5p" in kind)
    return vmem_cap, (2 if multi_tc else 1)


def _vmem_bytes_estimate(tn, d, k, xb, cb):
    # rough working set: double-buffered x/q/ind tiles, resident codebook copies
    # + ||e||^2, per-split accumulator buffers, (TN,K)-scale intermediates.
    io = 2 * tn * d * 2 * xb + 2 * tn * 4
    codebook = 2 * (2 * k * d * cb + k * 4)
    acc = 2 * 4 * (d * k + k + 1)
    tmp = tn * k * (9 + cb) + 6 * tn * d * 4
    return io + codebook + acc + tmp


def _pick_token_tile(n, d, k, base_tile, xb, cb, budget_bytes):
    tn = max(8, (min(base_tile, ((n + 7) // 8) * 8) // 8) * 8)
    while tn > 8 and _vmem_bytes_estimate(tn, d, k, xb, cb) > budget_bytes:
        tn = max(8, ((tn // 2) // 8) * 8)
    return tn


def vector_quantize_forward(x, state, *, decay=0.1, commitment=1.0, eps=1e-5,
                            token_tile=None, n_core_splits=None,
                            compute_dtype=None):
    """Functional VectorQuantize forward (training mode, Euclidean codebook).

    Returns ((quantize, embed_ind, loss), new_state) where new_state carries the
    EMA-updated codebook buffers (embed, cluster_size, embed_avg).
    compute_dtype defaults to bf16 when x arrives as bf16 (f32 otherwise); the
    bf16 MXU path can flip the argmax at exact near-ties vs the f32 reference.
    """
    embed = state["embed"].astype(jnp.float32)
    cluster_size = state["cluster_size"].astype(jnp.float32)
    embed_avg = state["embed_avg"].astype(jnp.float32)

    orig_shape = x.shape
    d = orig_shape[-1]
    k = embed.shape[0]

    if compute_dtype is None:
        compute_dtype = jnp.bfloat16 if x.dtype == np.dtype(jnp.bfloat16) else jnp.float32

    flatten = x.reshape(-1, d)
    n = flatten.shape[0]
    xb = np.dtype(x.dtype).itemsize
    cb = np.dtype(compute_dtype).itemsize

    # generation-aware VMEM budgeting (v7x: 64 MiB/TC, v5e/v6e: 128 MiB)
    vmem_cap, hw_cores = _tpu_hw_params()
    big_vmem = vmem_cap >= 100 * _MIB
    vmem_limit = min(100 * _MIB, (vmem_cap * 13) // 16)
    budget = min((76 if big_vmem else 26) * _MIB, (vmem_limit * 3) // 4)

    base_tile = token_tile if token_tile is not None else (2048 if big_vmem else 1024)
    tn = _pick_token_tile(n, d, k, base_tile, xb, cb, budget)

    num_tiles = -(-n // tn)
    splits = n_core_splits if n_core_splits is not None else hw_cores
    splits = max(1, min(splits, num_tiles))
    tiles_per_split = -(-num_tiles // splits)
    n_pad = splits * tiles_per_split * tn
    flatten_p = jnp.pad(flatten, ((0, n_pad - n), (0, 0))) if n_pad > n else flatten
    apply_mask = n_pad != n

    # grid-invariant operands, prepared once here (hoisted out of the kernel body):
    #   (D,K) codebook in compute dtype for the distance matmul,
    #   (K,D) codebook in compute dtype for the one-hot gather,
    #   (1,K) precomputed ||e_k||^2 row.
    embed_c = embed.astype(compute_dtype)                  # (K, D)
    embed_t_c = jnp.transpose(embed_c)                     # (D, K)
    e_sq_row = jnp.sum(embed * embed, axis=1)[None, :]     # (1, K) f32

    kernel = functools.partial(
        _vq_train_kernel, n_valid=n, tile=tn, tiles_per_split=tiles_per_split,
        apply_mask=apply_mask, compute_dtype=compute_dtype)

    tps = tiles_per_split
    out_shapes = (
        jax.ShapeDtypeStruct((n_pad, d), x.dtype),          # rotated quantize
        jax.ShapeDtypeStruct((n_pad, 1), jnp.int32),        # code indices
        jax.ShapeDtypeStruct((splits, 1, 1), jnp.float32),  # commitment SSE (per split)
        jax.ShapeDtypeStruct((splits, 1, k), jnp.float32),  # bins (per split)
        jax.ShapeDtypeStruct((splits, d, k), jnp.float32),  # x^T @ onehot (per split)
    )
    # The codebook / ||e||^2 specs use a constant index_map, so the pipeline keeps
    # them VMEM-resident across grid steps and never re-DMAs them.
    # TODO(synk): K-axis tiling with a running max/argmax for codebooks that do
    #             not fit VMEM (v7x's 64 MiB/TC).
    q_pad, ind_pad, sse3, bins3, esum3 = pl.pallas_call(
        kernel,
        out_shape=out_shapes,
        grid_spec=pltpu.PrefetchScalarGridSpec(
            num_scalar_prefetch=0,
            grid=(splits, tps),
            in_specs=[
                pl.BlockSpec((tn, d), lambda c, t: (c * tps + t, 0)),  # x tile
                pl.BlockSpec((d, k), lambda c, t: (0, 0)),             # codebook (D,K)
                pl.BlockSpec((k, d), lambda c, t: (0, 0)),             # codebook (K,D)
                pl.BlockSpec((1, k), lambda c, t: (0, 0)),             # ||e||^2 row
            ],
            out_specs=[
                pl.BlockSpec((tn, d), lambda c, t: (c * tps + t, 0)),
                pl.BlockSpec((tn, 1), lambda c, t: (c * tps + t, 0)),
                pl.BlockSpec((None, 1, 1), lambda c, t: (c, 0, 0)),
                pl.BlockSpec((None, 1, k), lambda c, t: (c, 0, 0)),
                pl.BlockSpec((None, d, k), lambda c, t: (c, 0, 0)),
            ],
        ),
        compiler_params=pltpu.CompilerParams(
            dimension_semantics=("parallel", "arbitrary"),
            vmem_limit_bytes=int(vmem_limit),
        ),
    )(flatten_p, embed_t_c, embed_c, e_sq_row)

    quantize = q_pad[:n].reshape(orig_shape)
    embed_ind = ind_pad[:n, 0].reshape(orig_shape[:-1])

    # commitment loss = F.mse_loss(quantize.detach(), x) * commitment
    loss = (sse3.sum() / (n * d)) * commitment

    # --- EMA codebook update (EuclideanCodebook, training) ---
    bins = bins3.sum(axis=0)[0]            # (K,)
    embed_sum = esum3.sum(axis=0)          # (D, K)
    new_cluster_size = cluster_size * decay + (1.0 - decay) * bins
    new_embed_avg = embed_avg * decay + (1.0 - decay) * embed_sum.T
    css = new_cluster_size.sum()
    cs = (new_cluster_size + eps) / (css + k * eps) * css      # laplace smoothing
    new_embed = new_embed_avg / cs[:, None]

    new_state = {
        "embed": new_embed,
        "cluster_size": new_cluster_size,
        "embed_avg": new_embed_avg,
    }
    return (quantize, embed_ind, loss), new_state


def reference_forward(x, state, decay=0.1, commitment=1.0, eps=1e-5):
    """Pure-JAX transcription of the PyTorch forward (training, defaults)."""
    hp = jax.lax.Precision.HIGHEST
    embed = state["embed"]
    cluster_size = state["cluster_size"]
    embed_avg = state["embed_avg"]
    orig_shape = x.shape
    d = orig_shape[-1]
    k = embed.shape[0]
    flatten = x.reshape(-1, d)

    dist = -(jnp.sum(flatten ** 2, axis=1, keepdims=True)
             - 2.0 * jnp.dot(flatten, embed.T, precision=hp)
             + jnp.sum(embed ** 2, axis=1)[None, :])
    ind = jnp.argmax(dist, axis=-1)
    quantize = embed[ind]
    onehot = jax.nn.one_hot(ind, k, dtype=jnp.float32)

    new_cluster_size = cluster_size * decay + (1.0 - decay) * onehot.sum(0)
    embed_sum = jnp.dot(flatten.T, onehot, precision=hp)
    new_embed_avg = embed_avg * decay + (1.0 - decay) * embed_sum.T
    css = new_cluster_size.sum()
    cs = (new_cluster_size + eps) / (css + k * eps) * css
    new_embed = new_embed_avg / cs[:, None]

    loss = jnp.mean((quantize - flatten) ** 2) * commitment

    e10 = 1e-10
    x_norm = jnp.linalg.norm(flatten, axis=1, keepdims=True)
    q_norm = jnp.linalg.norm(quantize, axis=1, keepdims=True)
    u = flatten / (x_norm + e10)
    qn = quantize / (q_norm + e10)
    w = (u + qn) / jnp.linalg.norm(u + qn, axis=1, keepdims=True)
    xw = jnp.sum(flatten * w, axis=1, keepdims=True)
    xu = jnp.sum(flatten * u, axis=1, keepdims=True)
    rot = flatten - 2.0 * xw * w + 2.0 * xu * qn
    q_final = rot * (q_norm / (x_norm + e10))

    new_state = {"embed": new_embed, "cluster_size": new_cluster_size,
                 "embed_avg": new_embed_avg}
    return (q_final.reshape(orig_shape), ind.reshape(orig_shape[:-1]), loss), new_state


if __name__ == "__main__":
    key = jax.random.PRNGKey(0)
    k1, k2, k3 = jax.random.split(key, 3)

    # --- case 1: single tile (batch=2, seq=8, dim=32, codebook=128) ---
    batch, seq, dim, codebook_size = 2, 8, 32, 128
    x = jax.random.normal(k1, (batch, seq, dim), jnp.float32)
    embed0 = jax.random.normal(k2, (codebook_size, dim), jnp.float32)
    state = {
        "embed": embed0,
        "cluster_size": jnp.zeros((codebook_size,), jnp.float32),
        "embed_avg": embed0,
    }

    (quantize, embed_ind, loss), new_state = vector_quantize_forward(x, state)
    jax.block_until_ready((quantize, embed_ind, loss, new_state))

    (q_ref, ind_ref, loss_ref), state_ref = reference_forward(x, state)
    assert bool(jnp.array_equal(embed_ind, ind_ref))
    assert bool(jnp.allclose(quantize, q_ref, atol=1e-3, rtol=1e-3))
    assert bool(jnp.allclose(loss, loss_ref, atol=1e-4, rtol=1e-3))
    assert bool(jnp.allclose(new_state["embed"], state_ref["embed"],
                             atol=1e-3, rtol=1e-3))
    assert bool(jnp.allclose(new_state["cluster_size"], state_ref["cluster_size"],
                             atol=1e-5, rtol=1e-5))

    # --- case 2: multi-tile + core-split + padded-token masking (201 tokens) ---
    x2 = jax.random.normal(k3, (3, 67, dim), jnp.float32)
    (q2, ind2, loss2), ns2 = vector_quantize_forward(x2, state, token_tile=64)
    jax.block_until_ready((q2, ind2, loss2, ns2))
    (q2_ref, ind2_ref, loss2_ref), ns2_ref = reference_forward(x2, state)
    assert bool(jnp.array_equal(ind2, ind2_ref))
    assert bool(jnp.allclose(q2, q2_ref, atol=1e-3, rtol=1e-3))
    assert bool(jnp.allclose(loss2, loss2_ref, atol=1e-4, rtol=1e-3))
    assert bool(jnp.allclose(ns2["embed"], ns2_ref["embed"], atol=1e-3, rtol=1e-3))
    assert bool(jnp.allclose(ns2["cluster_size"], ns2_ref["cluster_size"],
                             atol=1e-5, rtol=1e-5))

    # --- case 3: bf16 MXU fast path (sanity only; argmax may differ at near-ties) ---
    (q3, ind3, loss3), _ = vector_quantize_forward(x, state,
                                                   compute_dtype=jnp.bfloat16)
    jax.block_until_ready((q3, ind3, loss3))
    assert bool(jnp.all(jnp.isfinite(q3))) and bool(jnp.isfinite(loss3))

    print("KERNEL_OK")
</pallas_src>

<mosaic_0001>
module attributes {stable_mosaic.version = 11 : i64} {
  func.func @_vq_train_kernel(%arg0: i32, %arg1: i32, %arg2: memref<16x32xf32, #tpu.memory_space<vmem>>, %arg3: memref<32x128xf32, #tpu.memory_space<vmem>>, %arg4: memref<128x32xf32, #tpu.memory_space<vmem>>, %arg5: memref<1x128xf32, #tpu.memory_space<vmem>>, %arg6: memref<16x32xf32, #tpu.memory_space<vmem>>, %arg7: memref<16x1xi32, #tpu.memory_space<vmem>>, %arg8: memref<1x1x1xf32, #tpu.memory_space<vmem>>, %arg9: memref<1x1x128xf32, #tpu.memory_space<vmem>>, %arg10: memref<1x32x128xf32, #tpu.memory_space<vmem>>) attributes {dimension_semantics = [#tpu.dimension_semantics<parallel>, #tpu.dimension_semantics<arbitrary>], iteration_bounds = array<i64: 1, 1>, scalar_prefetch = 0 : i64, scratch_operands = 0 : i64, tpu.core_type = #tpu.core_type<tc>, window_params = [{transform_indices = @transform_0, window_bounds = array<i64: 16, 32>}, {pipeline_mode = #tpu.pipeline_mode<synchronous>, transform_indices = @transform_1, window_bounds = array<i64: 32, 128>}, {pipeline_mode = #tpu.pipeline_mode<synchronous>, transform_indices = @transform_2, window_bounds = array<i64: 128, 32>}, {pipeline_mode = #tpu.pipeline_mode<synchronous>, transform_indices = @transform_3, window_bounds = array<i64: 1, 128>}, {transform_indices = @transform_4, window_bounds = array<i64: 16, 32>}, {transform_indices = @transform_5, window_bounds = array<i64: 16, 1>}, {transform_indices = @transform_6, window_bounds = array<i64: 1, 1, 1>}, {transform_indices = @transform_7, window_bounds = array<i64: 1, 1, 128>}, {transform_indices = @transform_8, window_bounds = array<i64: 1, 32, 128>}]} {
    %c0_i32 = arith.constant 0 : i32
    %0 = arith.cmpi eq, %arg1, %c0_i32 : i32
    %1 = arith.extui %0 : i1 to i32
    %c0_i32_0 = arith.constant 0 : i32
    %2 = arith.cmpi ne, %1, %c0_i32_0 : i32
    scf.if %2 {
      %cst_48 = arith.constant 0.000000e+00 : f32
      %105 = vector.broadcast %cst_48 : f32 to vector<1x1xf32>
      %c0_49 = arith.constant 0 : index
      %c0_50 = arith.constant 0 : index
      %c0_51 = arith.constant 0 : index
      %106 = vector.load %arg8[%c0_49, %c0_50, %c0_51] : memref<1x1x1xf32, #tpu.memory_space<vmem>>, vector<1x1x1xf32>
      %107 = vector.shape_cast %106 : vector<1x1x1xf32> to vector<1x1xf32>
      %108 = vector.shape_cast %105 : vector<1x1xf32> to vector<1x1x1xf32>
      tpu.vector_store %arg8[%c0_49, %c0_50, %c0_51], %108 {strides = array<i32>} : memref<1x1x1xf32, #tpu.memory_space<vmem>>, vector<1x1x1xf32>,
      %cst_52 = arith.constant 0.000000e+00 : f32
      %109 = vector.broadcast %cst_52 : f32 to vector<1x128xf32>
      %c0_53 = arith.constant 0 : index
      %c0_54 = arith.constant 0 : index
      %c0_55 = arith.constant 0 : index
      %110 = vector.load %arg9[%c0_53, %c0_54, %c0_55] : memref<1x1x128xf32, #tpu.memory_space<vmem>>, vector<1x1x128xf32>
      %111 = vector.shape_cast %110 : vector<1x1x128xf32> to vector<1x128xf32>
      %112 = vector.shape_cast %109 : vector<1x128xf32> to vector<1x1x128xf32>
      tpu.vector_store %arg9[%c0_53, %c0_54, %c0_55], %112 {strides = array<i32>} : memref<1x1x128xf32, #tpu.memory_space<vmem>>, vector<1x1x128xf32>,
      %cst_56 = arith.constant 0.000000e+00 : f32
      %113 = vector.broadcast %cst_56 : f32 to vector<32x128xf32>
      %c0_57 = arith.constant 0 : index
      %c0_58 = arith.constant 0 : index
      %c0_59 = arith.constant 0 : index
      %114 = vector.load %arg10[%c0_57, %c0_58, %c0_59] : memref<1x32x128xf32, #tpu.memory_space<vmem>>, vector<1x32x128xf32>
      %115 = vector.shape_cast %114 : vector<1x32x128xf32> to vector<32x128xf32>
      %116 = vector.shape_cast %113 : vector<32x128xf32> to vector<1x32x128xf32>
      tpu.vector_store %arg10[%c0_57, %c0_58, %c0_59], %116 {strides = array<i32>} : memref<1x32x128xf32, #tpu.memory_space<vmem>>, vector<1x32x128xf32>,
    } else {
    }
    %c0 = arith.constant 0 : index
    %c0_1 = arith.constant 0 : index
    %3 = vector.load %arg2[%c0, %c0_1] : memref<16x32xf32, #tpu.memory_space<vmem>>, vector<16x32xf32>
    %c0_2 = arith.constant 0 : index
    %c0_3 = arith.constant 0 : index
    %4 = vector.load %arg3[%c0_2, %c0_3] : memref<32x128xf32, #tpu.memory_space<vmem>>, vector<32x128xf32>
    %cst = arith.constant dense<0.000000e+00> : vector<16x128xf32>
    %5 = tpu.matmul %3, %4, %cst {dimension_numbers = #tpu.dot_dimension_numbers<[1], [0], [0], [1], [0, 0, 1, 1], [], []>} : vector<16x32xf32>, vector<32x128xf32>, vector<16x128xf32> -> vector<16x128xf32>
    %cst_4 = arith.constant 2.000000e+00 : f32
    %6 = vector.broadcast %cst_4 : f32 to vector<16x128xf32>
    %7 = arith.mulf %6, %5 : vector<16x128xf32>
    %c0_5 = arith.constant 0 : index
    %c0_6 = arith.constant 0 : index
    %8 = vector.load %arg5[%c0_5, %c0_6] : memref<1x128xf32, #tpu.memory_space<vmem>>, vector<1x128xf32>
    %9 = vector.broadcast %8 : vector<1x128xf32> to vector<16x128xf32>
    %10 = arith.subf %7, %9 : vector<16x128xf32>
    %cst_7 = arith.constant dense<0xFF800000> : vector<16xf32>
    %11 = vector.multi_reduction <maximumf>, %10, %cst_7 [1] : vector<16x128xf32> to vector<16xf32>
    %12 = vector.shape_cast %11 : vector<16xf32> to vector<16x1xf32>
    %13 = tpu.iota {dimensions = array<i32: 1>} : vector<1x128xi32>
    %14 = vector.broadcast %12 : vector<16x1xf32> to vector<16x128xf32>
    %15 = arith.cmpf oeq, %10, %14 : vector<16x128xf32>
    %c128_i32 = arith.constant 128 : i32
    %16 = vector.shape_cast %13 : vector<1x128xi32> to vector<1x128xi32>
    %17 = vector.broadcast %16 : vector<1x128xi32> to vector<16x128xi32>
    %18 = vector.broadcast %c128_i32 : i32 to vector<16x128xi32>
    %19 = arith.select %15, %17, %18 : vector<16x128xi1>, vector<16x128xi32>
    %cst_8 = arith.constant dense<2147483647> : vector<16xi32>
    %20 = vector.multi_reduction <minsi>, %19, %cst_8 [1] : vector<16x128xi32> to vector<16xi32>
    %21 = vector.shape_cast %20 : vector<16xi32> to vector<16x1xi32>
    %22 = vector.broadcast %13 : vector<1x128xi32> to vector<16x128xi32>
    %23 = vector.broadcast %21 : vector<16x1xi32> to vector<16x128xi32>
    %24 = arith.cmpi eq, %22, %23 : vector<16x128xi32>
    %25 = arith.extui %24 : vector<16x128xi1> to vector<16x128xi32>
    %26 = arith.sitofp %25 : vector<16x128xi32> to vector<16x128xf32>
    %cst_9 = arith.constant dense<0.000000e+00> : vector<128xf32>
    %27 = vector.multi_reduction <add>, %26, %cst_9 [0] : vector<16x128xf32> to vector<128xf32>
    %28 = vector.shape_cast %27 : vector<128xf32> to vector<1x128xf32>
    %c0_10 = arith.constant 0 : index
    %c0_11 = arith.constant 0 : index
    %29 = vector.load %arg4[%c0_10, %c0_11] : memref<128x32xf32, #tpu.memory_space<vmem>>, vector<128x32xf32>
    %cst_12 = arith.constant dense<0.000000e+00> : vector<16x32xf32>
    %30 = tpu.matmul %26, %29, %cst_12 {dimension_numbers = #tpu.dot_dimension_numbers<[1], [0], [0], [1], [0, 0, 1, 1], [], []>} : vector<16x128xf32>, vector<128x32xf32>, vector<16x32xf32> -> vector<16x32xf32>
    %31 = arith.subf %30, %3 : vector<16x32xf32>
    %32 = arith.mulf %31, %31 : vector<16x32xf32>
    %cst_13 = arith.constant dense<0.000000e+00> : vector<16xf32>
    %33 = vector.multi_reduction <add>, %32, %cst_13 [1] : vector<16x32xf32> to vector<16xf32>
    %34 = vector.shape_cast %33 : vector<16xf32> to vector<16x1xf32>
    %c0_14 = arith.constant 0 : index
    %c0_15 = arith.constant 0 : index
    %c0_16 = arith.constant 0 : index
    %35 = vector.load %arg8[%c0_14, %c0_15, %c0_16] : memref<1x1x1xf32, #tpu.memory_space<vmem>>, vector<1x1x1xf32>
    %36 = vector.shape_cast %35 : vector<1x1x1xf32> to vector<1x1xf32>
    %37 = vector.shape_cast %34 : vector<16x1xf32> to vector<1x16x1xf32>
    %cst_17 = arith.constant dense<0.000000e+00> : vector<1xf32>
    %38 = vector.multi_reduction <add>, %37, %cst_17 [1, 2] : vector<1x16x1xf32> to vector<1xf32>
    %39 = vector.shape_cast %38 : vector<1xf32> to vector<1x1x1xf32>
    %40 = vector.extract %39[0, 0, 0] : f32 from vector<1x1x1xf32>
    %41 = vector.broadcast %40 : f32 to vector<1x1xf32>
    %42 = arith.addf %36, %41 : vector<1x1xf32>
    %c0_18 = arith.constant 0 : index
    %c0_19 = arith.constant 0 : index
    %c0_20 = arith.constant 0 : index
    %43 = vector.load %arg8[%c0_18, %c0_19, %c0_20] : memref<1x1x1xf32, #tpu.memory_space<vmem>>, vector<1x1x1xf32>
    %44 = vector.shape_cast %43 : vector<1x1x1xf32> to vector<1x1xf32>
    %45 = vector.shape_cast %42 : vector<1x1xf32> to vector<1x1x1xf32>
    tpu.vector_store %arg8[%c0_18, %c0_19, %c0_20], %45 {strides = array<i32>} : memref<1x1x1xf32, #tpu.memory_space<vmem>>, vector<1x1x1xf32>,
    %c0_21 = arith.constant 0 : index
    %c0_22 = arith.constant 0 : index
    %c0_23 = arith.constant 0 : index
    %46 = vector.load %arg9[%c0_21, %c0_22, %c0_23] : memref<1x1x128xf32, #tpu.memory_space<vmem>>, vector<1x1x128xf32>
    %47 = vector.shape_cast %46 : vector<1x1x128xf32> to vector<1x128xf32>
    %48 = arith.addf %47, %28 : vector<1x128xf32>
    %c0_24 = arith.constant 0 : index
    %c0_25 = arith.constant 0 : index
    %c0_26 = arith.constant 0 : index
    %49 = vector.load %arg9[%c0_24, %c0_25, %c0_26] : memref<1x1x128xf32, #tpu.memory_space<vmem>>, vector<1x1x128xf32>
    %50 = vector.shape_cast %49 : vector<1x1x128xf32> to vector<1x128xf32>
    %51 = vector.shape_cast %48 : vector<1x128xf32> to vector<1x1x128xf32>
    tpu.vector_store %arg9[%c0_24, %c0_25, %c0_26], %51 {strides = array<i32>} : memref<1x1x128xf32, #tpu.memory_space<vmem>>, vector<1x1x128xf32>,
    %c0_27 = arith.constant 0 : index
    %c0_28 = arith.constant 0 : index
    %c0_29 = arith.constant 0 : index
    %52 = vector.load %arg10[%c0_27, %c0_28, %c0_29] : memref<1x32x128xf32, #tpu.memory_space<vmem>>, vector<1x32x128xf32>
    %53 = vector.shape_cast %52 : vector<1x32x128xf32> to vector<32x128xf32>
    %cst_30 = arith.constant dense<0.000000e+00> : vector<32x128xf32>
    %54 = tpu.matmul %3, %26, %cst_30 {dimension_numbers = #tpu.dot_dimension_numbers<[0], [0], [1], [1], [0, 1, 1, 1], [], []>} : vector<16x32xf32>, vector<16x128xf32>, vector<32x128xf32> -> vector<32x128xf32>
    %55 = arith.addf %53, %54 : vector<32x128xf32>
    %c0_31 = arith.constant 0 : index
    %c0_32 = arith.constant 0 : index
    %c0_33 = arith.constant 0 : index
    %56 = vector.load %arg10[%c0_31, %c0_32, %c0_33] : memref<1x32x128xf32, #tpu.memory_space<vmem>>, vector<1x32x128xf32>
    %57 = vector.shape_cast %56 : vector<1x32x128xf32> to vector<32x128xf32>
    %58 = vector.shape_cast %55 : vector<32x128xf32> to vector<1x32x128xf32>
    tpu.vector_store %arg10[%c0_31, %c0_32, %c0_33], %58 {strides = array<i32>} : memref<1x32x128xf32, #tpu.memory_space<vmem>>, vector<1x32x128xf32>,
    %59 = arith.mulf %3, %3 : vector<16x32xf32>
    %cst_34 = arith.constant dense<0.000000e+00> : vector<16xf32>
    %60 = vector.multi_reduction <add>, %59, %cst_34 [1] : vector<16x32xf32> to vector<16xf32>
    %61 = vector.shape_cast %60 : vector<16xf32> to vector<16x1xf32>
    %62 = math.sqrt %61 : vector<16x1xf32>
    %cst_35 = arith.constant 1.000000e-10 : f32
    %63 = vector.broadcast %cst_35 : f32 to vector<16x1xf32>
    %64 = arith.addf %62, %63 : vector<16x1xf32>
    %cst_36 = arith.constant 1.000000e+00 : f32
    %65 = vector.broadcast %cst_36 : f32 to vector<16x1xf32>
    %66 = arith.divf %65, %64 : vector<16x1xf32>
    %67 = arith.mulf %30, %30 : vector<16x32xf32>
    %cst_37 = arith.constant dense<0.000000e+00> : vector<16xf32>
    %68 = vector.multi_reduction <add>, %67, %cst_37 [1] : vector<16x32xf32> to vector<16xf32>
    %69 = vector.shape_cast %68 : vector<16xf32> to vector<16x1xf32>
    %70 = math.sqrt %69 : vector<16x1xf32>
    %71 = vector.broadcast %66 : vector<16x1xf32> to vector<16x32xf32>
    %72 = arith.mulf %3, %71 : vector<16x32xf32>
    %cst_38 = arith.constant 1.000000e-10 : f32
    %73 = vector.broadcast %cst_38 : f32 to vector<16x1xf32>
    %74 = arith.addf %70, %73 : vector<16x1xf32>
    %cst_39 = arith.constant 1.000000e+00 : f32
    %75 = vector.broadcast %cst_39 : f32 to vector<16x1xf32>
    %76 = arith.divf %75, %74 : vector<16x1xf32>
    %77 = vector.broadcast %76 : vector<16x1xf32> to vector<16x32xf32>
    %78 = arith.mulf %30, %77 : vector<16x32xf32>
    %79 = arith.addf %72, %78 : vector<16x32xf32>
    %80 = arith.mulf %79, %79 : vector<16x32xf32>
    %cst_40 = arith.constant dense<0.000000e+00> : vector<16xf32>
    %81 = vector.multi_reduction <add>, %80, %cst_40 [1] : vector<16x32xf32> to vector<16xf32>
    %82 = vector.shape_cast %81 : vector<16xf32> to vector<16x1xf32>
    %83 = math.rsqrt %82 : vector<16x1xf32>
    %84 = vector.broadcast %83 : vector<16x1xf32> to vector<16x32xf32>
    %85 = arith.mulf %79, %84 : vector<16x32xf32>
    %86 = arith.mulf %3, %85 : vector<16x32xf32>
    %cst_41 = arith.constant dense<0.000000e+00> : vector<16xf32>
    %87 = vector.multi_reduction <add>, %86, %cst_41 [1] : vector<16x32xf32> to vector<16xf32>
    %88 = vector.shape_cast %87 : vector<16xf32> to vector<16x1xf32>
    %89 = arith.mulf %61, %66 : vector<16x1xf32>
    %cst_42 = arith.constant 2.000000e+00 : f32
    %90 = vector.broadcast %cst_42 : f32 to vector<16x1xf32>
    %91 = arith.mulf %90, %88 : vector<16x1xf32>
    %92 = vector.broadcast %91 : vector<16x1xf32> to vector<16x32xf32>
    %93 = arith.mulf %92, %85 : vector<16x32xf32>
    %94 = arith.subf %3, %93 : vector<16x32xf32>
    %cst_43 = arith.constant 2.000000e+00 : f32
    %95 = vector.broadcast %cst_43 : f32 to vector<16x1xf32>
    %96 = arith.mulf %95, %89 : vector<16x1xf32>
    %97 = vector.broadcast %96 : vector<16x1xf32> to vector<16x32xf32>
    %98 = arith.mulf %97, %78 : vector<16x32xf32>
    %99 = arith.addf %94, %98 : vector<16x32xf32>
    %100 = arith.mulf %70, %66 : vector<16x1xf32>
    %101 = vector.broadcast %100 : vector<16x1xf32> to vector<16x32xf32>
    %102 = arith.mulf %99, %101 : vector<16x32xf32>
    %c0_44 = arith.constant 0 : index
    %c0_45 = arith.constant 0 : index
    %103 = vector.load %arg6[%c0_44, %c0_45] : memref<16x32xf32, #tpu.memory_space<vmem>>, vector<16x32xf32>
    tpu.vector_store %arg6[%c0_44, %c0_45], %102 {strides = array<i32>} : memref<16x32xf32, #tpu.memory_space<vmem>>, vector<16x32xf32>,
    %c0_46 = arith.constant 0 : index
    %c0_47 = arith.constant 0 : index
    %104 = vector.load %arg7[%c0_46, %c0_47] : memref<16x1xi32, #tpu.memory_space<vmem>>, vector<16x1xi32>
    tpu.vector_store %arg7[%c0_46, %c0_47], %21 {strides = array<i32>} : memref<16x1xi32, #tpu.memory_space<vmem>>, vector<16x1xi32>,
    return
  }
  func.func @transform_0(%arg0: i32, %arg1: i32) -> (i32, i32) {
    %c1_i32 = arith.constant 1 : i32
    %0 = arith.muli %arg0, %c1_i32 : i32
    %1 = arith.addi %0, %arg1 : i32
    %c0_i32 = arith.constant 0 : i32
    %c0_i32_0 = arith.constant 0 : i32
    return %1, %c0_i32 : i32, i32
  }
  func.func @transform_1(%arg0: i32, %arg1: i32) -> (i32, i32) {
    %c0_i32 = arith.constant 0 : i32
    %c0_i32_0 = arith.constant 0 : i32
    %c0_i32_1 = arith.constant 0 : i32
    return %c0_i32, %c0_i32_0 : i32, i32
  }
  func.func @transform_2(%arg0: i32, %arg1: i32) -> (i32, i32) {
    %c0_i32 = arith.constant 0 : i32
    %c0_i32_0 = arith.constant 0 : i32
    %c0_i32_1 = arith.constant 0 : i32
    return %c0_i32, %c0_i32_0 : i32, i32
  }
  func.func @transform_3(%arg0: i32, %arg1: i32) -> (i32, i32) {
    %c0_i32 = arith.constant 0 : i32
    %c0_i32_0 = arith.constant 0 : i32
    %c0_i32_1 = arith.constant 0 : i32
    return %c0_i32, %c0_i32_0 : i32, i32
  }
  func.func @transform_4(%arg0: i32, %arg1: i32) -> (i32, i32) {
    %c1_i32 = arith.constant 1 : i32
    %0 = arith.muli %arg0, %c1_i32 : i32
    %1 = arith.addi %0, %arg1 : i32
    %c0_i32 = arith.constant 0 : i32
    %c0_i32_0 = arith.constant 0 : i32
    return %1, %c0_i32 : i32, i32
  }
  func.func @transform_5(%arg0: i32, %arg1: i32) -> (i32, i32) {
    %c1_i32 = arith.constant 1 : i32
    %0 = arith.muli %arg0, %c1_i32 : i32
    %1 = arith.addi %0, %arg1 : i32
    %c0_i32 = arith.constant 0 : i32
    %c0_i32_0 = arith.constant 0 : i32
    return %1, %c0_i32 : i32, i32
  }
  func.func @transform_6(%arg0: i32, %arg1: i32) -> (i32, i32, i32) {
    %c0_i32 = arith.constant 0 : i32
    %c0_i32_0 = arith.constant 0 : i32
    %c0_i32_1 = arith.constant 0 : i32
    return %arg0, %c0_i32, %c0_i32_0 : i32, i32, i32
  }
  func.func @transform_7(%arg0: i32, %arg1: i32) -> (i32, i32, i32) {
    %c0_i32 = arith.constant 0 : i32
    %c0_i32_0 = arith.constant 0 : i32
    %c0_i32_1 = arith.constant 0 : i32
    return %arg0, %c0_i32, %c0_i32_0 : i32, i32, i32
  }
  func.func @transform_8(%arg0: i32, %arg1: i32) -> (i32, i32, i32) {
    %c0_i32 = arith.constant 0 : i32
    %c0_i32_0 = arith.constant 0 : i32
    %c0_i32_1 = arith.constant 0 : i32
    return %arg0, %c0_i32, %c0_i32_0 : i32, i32, i32
  }
}

</mosaic_0001>

<bundles_post_ra>
// kernel: tpu_custom_call.1
= control target key start
LH: loop header
LB: loop body
LE: loop exit
PB: predicated region body
PF: predicated region fallthrough
CT: control target
= control target key end

     0   :  { %14 = vsyncpa [#allocation3], 0  ;;  %s1401_s0 = inlined_call_operand.hbm [shape: f32[16,32], index: 0, kind: input, shape index: {}]   ;;  %s1402_s1 = inlined_call_operand.hbm [shape: f32[32,128], index: 1, kind: input, shape index: {}]   ;;  %s1403_s2 = inlined_call_operand.hbm [shape: f32[128,32], index: 2, kind: input, shape index: {}]   ;;  %s1404_s3 = inlined_call_operand.hbm [shape: f32[1,128], index: 3, kind: input, shape index: {}]   ;;  %s1405_s4 = inlined_call_operand.hbm [shape: f32[16,32], index: 4, kind: output, shape index: {0}]   ;;  %s1406_s5 = inlined_call_operand.hbm [shape: s32[16,1], index: 5, kind: output, shape index: {1}]   ;;  %s1407_s6 = inlined_call_operand.hbm [shape: f32[1,1,1], index: 6, kind: output, shape index: {2}]   ;;  %s1408_s7 = inlined_call_operand.hbm [shape: f32[1,1,128], index: 7, kind: output, shape index: {3}]   ;;  %s1409_s8 = inlined_call_operand.hbm [shape: f32[1,32,128], index: 8, kind: output, shape index: {4}]  }
   0x1   :  { %15 = vsyncpa [#allocation6], 0 }
   0x2   :  { %16 = vsyncpa [#allocation9], 0 }
   0x3   :  { %17 = vsyncpa [#allocation4], 0 }
   0x4   :  { %18 = vsyncpa [#allocation12], 0 }
   0x5   :  { %19 = vsyncpa [#allocation15], 0  ;;  %s1091_s27 = smov [#allocation5]   ;;  %s1092_s29 = smov [#allocation2]  }
   0x6   :  { %s41_s28 = sshll.u32 %s1091_s27, 4  ;;  %s29_s30 = sshll.u32 %s1092_s29, 4  ;;  %s42_s28 = int_to_ptr.vmem [resolvable:$true] %s41_s28  ;;  %s1150_s30 = int_to_ptr.vmem [resolvable:$true] %s29_s30 }
   0x7   :  { %s881_s11 = scalar_lea.hbm %s1402_s1, 512 }
   0x8   :  { %p882_p0 = scmp.ne.s32.totalorder %s1402_s1, %s881_s11  ;;  %p885_p1 = scmp.lt.u32.totalorder %s881_s11, %s1402_s1 }
   0xa   :  { %p887_p2 = pnand %p885_p1, %p882_p0 }
   0xc   :  { %890 = shalt.err (!%p887_p2)
}
   0xd   :  { %s891_s16 = scalar_lea.vmem %s42_s28, 512  ;;  %p896_p4 = scmp.lt.s32.totalorder %s42_s28, %s42_s28 }
   0xe   :  { %p892_p3 = scmp.ne.s32.totalorder %s42_s28, %s891_s16  ;;  %p897_p5 = scmp.lt.s32.totalorder %s891_s16, %s891_s16 }
  0x10   :  { %p898_p6 = por %p897_p5, %p896_p4 }
  0x12   :  { %p899_p7 = pnand %p898_p6, %p892_p3 }
  0x14   :  { %902 = shalt.err (!%p899_p7)
}
  0x15   :  { %s1093_s17 = smov 128   ;;  %s1094_s18 = smov 8  }
  0x16   :  { %47 = dma.hbm_to_vmem [thread:$0]  %s1402_s1, 512, %s42_s28, [#allocation6], %s1093_s17, %s1093_s17, %s1094_s18  }
  0x17   :  { %s903_s23 = scalar_lea.hbm %s1401_s0, 256 }
  0x18   :  { %p904_p8 = scmp.ne.s32.totalorder %s1401_s0, %s903_s23  ;;  %p907_p9 = scmp.lt.u32.totalorder %s903_s23, %s1401_s0 }
  0x1a   :  { %p909_p10 = pnand %p907_p9, %p904_p8 }
  0x1c   :  { %912 = shalt.err (!%p909_p10)
}
  0x1d   :  { %s913_s29 = scalar_lea.vmem %s1150_s30, 256  ;;  %p918_p12 = scmp.lt.s32.totalorder %s1150_s30, %s1150_s30 }
  0x1e   :  { %p914_p11 = scmp.ne.s32.totalorder %s1150_s30, %s913_s29  ;;  %p919_p13 = scmp.lt.s32.totalorder %s913_s29, %s913_s29 }
  0x20   :  { %p920_p0 = por %p919_p13, %p918_p12 }
  0x22   :  { %p921_p1 = pnand %p920_p0, %p914_p11 }
  0x24   :  { %924 = shalt.err (!%p921_p1)
}
  0x25   :  { %35 = dma.hbm_to_vmem [thread:$0]  %s1401_s0, 256, %s1150_s30, [#allocation3], %s1093_s17, %s1093_s17, %s1094_s18  }
  0x26   :  { %s1095_s9 = smov [#allocation7]   ;;  %s1096_s11 = smov [#allocation8]  }
  0x27   :  { %s53_s10 = sshll.u32 %s1095_s9, 4  ;;  %s66_s12 = sshll.u32 %s1096_s11, 4  ;;  %s54_s10 = int_to_ptr.vmem [resolvable:$true] %s53_s10  ;;  %s67_s12 = int_to_ptr.vmem [resolvable:$true] %s66_s12 }
  0x28   :  { %s925_s15 = scalar_lea.hbm %s1403_s2, 2048 }
  0x29   :  { %p926_p2 = scmp.ne.s32.totalorder %s1403_s2, %s925_s15  ;;  %p929_p3 = scmp.lt.u32.totalorder %s925_s15, %s1403_s2 }
  0x2b   :  { %p931_p4 = pnand %p929_p3, %p926_p2 }
  0x2d   :  { %934 = shalt.err (!%p931_p4)
}
  0x2e   :  { %s935_s0 = scalar_lea.vmem %s54_s10, 2048  ;;  %p940_p6 = scmp.lt.s32.totalorder %s54_s10, %s54_s10 }
  0x2f   :  { %p936_p5 = scmp.ne.s32.totalorder %s54_s10, %s935_s0  ;;  %p941_p7 = scmp.lt.s32.totalorder %s935_s0, %s935_s0 }
  0x31   :  { %p942_p8 = por %p941_p7, %p940_p6 }
  0x33   :  { %p943_p9 = pnand %p942_p8, %p936_p5 }
  0x35   :  { %946 = shalt.err (!%p943_p9)
}
  0x36   :  { %59 = dma.hbm_to_vmem [thread:$0]  %s1403_s2, 2048, %s54_s10, [#allocation6], %s1093_s17, %s1093_s17, %s1094_s18  }
  0x37   :  { %s947_s25 = scalar_lea.hbm %s1404_s3, 16 }
  0x38   :  { %p948_p10 = scmp.ne.s32.totalorder %s1404_s3, %s947_s25  ;;  %p951_p11 = scmp.lt.u32.totalorder %s947_s25, %s1404_s3 }
  0x3a   :  { %p953_p12 = pnand %p951_p11, %p948_p10 }
  0x3c   :  { %956 = shalt.err (!%p953_p12)
}
  0x3d   :  { %s957_s28 = scalar_lea.vmem %s67_s12, 16  ;;  %s961_s9 = scalar_lea.vmem %s67_s12, 32 }
  0x3e   :  { %p958_p13 = scmp.ne.s32.totalorder %s67_s12, %s957_s28  ;;  %p962_p0 = scmp.lt.s32.totalorder %s67_s12, %s67_s12 }
  0x3f   :  { %p963_p1 = scmp.lt.s32.totalorder %s961_s9, %s957_s28 }
  0x41   :  { %p964_p2 = por %p963_p1, %p962_p0 }
  0x43   :  { %p965_p3 = pnand %p964_p2, %p958_p13 }
  0x45   :  { %968 = shalt.err (!%p965_p3)
}
  0x46   :  { %69 = dma.hbm_to_vmem [thread:$0]  %s1404_s3, 16, %s67_s12, [#allocation9]  }
  0x47   :  { %1079 = dma.done.wait [#allocation3], 256  }
  0x48   :  { %1080 = vsyncadd [#allocation3], 4294967040 }
  0x49   :  { %1081 = dma.done.wait [#allocation6], 2560  }
  0x4a   :  { %1082 = vsyncadd [#allocation6], 4294964736 }
  0x4b   :  { %1083 = dma.done.wait [#allocation9], 16  }
  0x4c   :  { %1084 = vsyncadd [#allocation9], 4294967280  ;;  %vm105_vm0 = vcmask 261120   ;;  %v101_v0 = vld [vmem:[#allocation5] sm:$0xff]  ;;  %v102_v1 = vld [vmem:[#allocation5 + $0x8] sm:$0xff]  ;;  %v202_v15 = vlaneseq  ;;  %v1097_v57 = vmov 0.0  }
  0x4d   :  { %v103_v2 = vld [vmem:[#allocation5 + $0x10] sm:$0xff]  ;;  %v801_v3 = vpack.c.bf16 %v102_v1, %v101_v0  ;;  %v104_v4 = vld [vmem:[#allocation5 + $0x18] sm:$0xff]  ;;  %v704_v10 = vld [vmem:[#allocation8] ss:$0 sm:$0xff]  ;;  %94 = vst [vmem:[#allocation14] sm:$0x1] %v1097_v57 }
  0x4e   :  { %v1214_v5 = vld [vmem:[#allocation2] sm:$0xff]  ;;  %v805_v6 = vpack.c.bf16 %v104_v4, %v103_v2  ;;  %v1218_v7 = vld [vmem:[#allocation2 + $0x8] sm:$0xff]  ;;  %v1222_v16 = vand.u32 127, %v202_v15  ;;  %v249_v25 = vld [vmem:[#allocation7] sm:$0xff]  ;;  %vm351_vm5 = vcmask 7168   ;;  %s1100_s3 = smov [#allocation11]  }
  0x4f   :  { %753 = vmatprep.mubr.msk.f32.mxu0 %vm105_vm0, %v1214_v5  ;;  %802 = vmatprep.subr.bf16.mxu0 %v801_v3  ;;  %v250_v26 = vld [vmem:[#allocation7 + $0x8] sm:$0xff]  ;;  %v251_v27 = vld [vmem:[#allocation7 + $0x10] sm:$0xff]  ;;  %v252_v29 = vld [vmem:[#allocation7 + $0x18] sm:$0xff]  ;;  %v513_v58 = vmul.f32 %v1214_v5, %v1214_v5  ;;  %v514_v59 = vmul.f32 %v1218_v7, %v1218_v7  ;;  %s642_s11 = sshll.u32 %s1100_s3, 4  ;;  %s1101_s12 = smov [#allocation14]   ;;  %s643_s11 = int_to_ptr.vmem [resolvable:$true] %s642_s11 }
  0x50   :  { %804 = vmatpush3.bf16.msra.mxu0 %v801_v3  ;;  %v809_v28 = vpack.c.bf16 %v250_v26, %v249_v25  ;;  %v813_v30 = vpack.c.bf16 %v252_v29, %v251_v27  ;;  %v253_v31 = vld [vmem:[#allocation7 + $0x20] sm:$0xff]  ;;  %v254_v32 = vld [vmem:[#allocation7 + $0x28] sm:$0xff]  ;;  %v255_v34 = vld [vmem:[#allocation7 + $0x30] sm:$0xff]  ;;  %s665_s13 = sshll.u32 %s1101_s12, 4  ;;  %s969_s14 = scalar_lea.vmem %s643_s11, 256  ;;  %s666_s13 = int_to_ptr.vmem [resolvable:$true] %s665_s13 }
  0x51   :  { %806 = vmatprep.subr.bf16.mxu0 %v805_v6  ;;  %v817_v33 = vpack.c.bf16 %v254_v32, %v253_v31  ;;  %v256_v35 = vld [vmem:[#allocation7 + $0x38] sm:$0xff]  ;;  %v257_v37 = vld [vmem:[#allocation7 + $0x40] sm:$0xff]  ;;  %v258_v38 = vld [vmem:[#allocation7 + $0x48] sm:$0xff]  ;;  %v515_v60 = vsel %vm105_vm0, %v513_v58, 0.0  ;;  %v518_v61 = vsel %vm105_vm0, %v514_v59, 0.0  ;;  %p970_p4 = scmp.ne.s32.totalorder %s643_s11, %s969_s14  ;;  %p974_p5 = scmp.lt.s32.totalorder %s643_s11, %s643_s11 }
  0x52   :  { %810 = vmatprep.subr.bf16.mxu1 %v809_v28  ;;  %v821_v36 = vpack.c.bf16 %v256_v35, %v255_v34  ;;  %v825_v39 = vpack.c.bf16 %v258_v38, %v257_v37  ;;  %v259_v40 = vld [vmem:[#allocation7 + $0x50] sm:$0xff]  ;;  %v260_v41 = vld [vmem:[#allocation7 + $0x58] sm:$0xff]  ;;  %v261_v51 = vld [vmem:[#allocation7 + $0x60] sm:$0xff]  ;;  %p975_p6 = scmp.lt.s32.totalorder %s969_s14, %s969_s14 }
  0x53   :  { %812 = vmatpush3.bf16.msra.mxu1 %v809_v28  ;;  %v829_v42 = vpack.c.bf16 %v260_v41, %v259_v40  ;;  %v262_v52 = vld [vmem:[#allocation7 + $0x68] sm:$0xff]  ;;  %v263_v54 = vld [vmem:[#allocation7 + $0x70] sm:$0xff]  ;;  %v264_v55 = vld [vmem:[#allocation7 + $0x78] sm:$0xff] }
  0x54   :  { %808 = vmatpush3.bf16.msra.mxu0 %v805_v6  ;;  %814 = vmatprep.subr.bf16.mxu1 %v813_v30  ;;  %v833_v53 = vpack.c.bf16 %v262_v52, %v261_v51  ;;  %v837_v56 = vpack.c.bf16 %v264_v55, %v263_v54  ;;  %p976_p7 = por %p975_p6, %p974_p5 }
  0x56   :  { %p977_p8 = pnand %p976_p7, %p970_p4 }
  0x57   :  { %754 = vmatmul.mubr.msk.f32.vlgmr.msra.gmra.mrb[0].mxu0 %vm105_vm0, %v1218_v7  ;;  %816 = vmatpush3.bf16.msra.mxu1 %v813_v30 }
  0x58   :  { %818 = vmatprep.subr.bf16.mxu1 %v817_v33 }
  0x5b   :  { %820 = vmatpush3.bf16.msra.mxu1 %v817_v33 }
  0x5c   :  { %822 = vmatprep.subr.bf16.mxu1 %v821_v36 }
  0x5f   :  { %824 = vmatpush3.bf16.msra.mxu1 %v821_v36 }
  0x60   :  { %826 = vmatprep.subr.bf16.mxu1 %v825_v39 }
  0x63   :  { %828 = vmatpush3.bf16.msra.mxu1 %v825_v39 }
  0x64   :  { %830 = vmatprep.subr.bf16.mxu1 %v829_v42 }
  0x67   :  { %832 = vmatpush3.bf16.msra.mxu1 %v829_v42 }
  0x68   :  { %834 = vmatprep.subr.bf16.mxu1 %v833_v53 }
  0x6b   :  { %836 = vmatpush3.bf16.msra.mxu1 %v833_v53 }
  0x6c   :  { %838 = vmatprep.subr.bf16.mxu1 %v837_v56 }
  0x6f   :  { %840 = vmatpush3.bf16.msra.mxu1 %v837_v56 }
 0x12a   :  { %v755_v8 = vpop.f32.mrb[0].mxu0 }
 0x12b   :  { %v178_v9 = vpop.f32.mrb[1].mxu0  ;;  %v188_v12 = vmul.f32 2.0, %v755_v8 }
 0x12c   :  { %v187_v11 = vmul.f32 2.0, %v178_v9  ;;  %v1098_v9 = vmov 1.0  }
 0x12d   :  { %v197_v14 = vsub.f32 %v188_v12, %v704_v10 }
 0x12e   :  { %v196_v13 = vsub.f32 %v187_v11, %v704_v10 }
 0x130   :  { %198 = vmax.xlane.f32.xlu0 %v196_v13 }
 0x134   :  { %200 = vmax.xlane.f32.xlu0 %v197_v14 }
 0x1bd   :  { %v199_v17 = vpop.xlane.xlu0 %198 }
 0x1be   :  { %vm204_vm1 = vcmp.eq.f32.partialorder %v196_v13, %v199_v17 }
 0x1bf   :  { %v206_v18 = vsel %vm204_vm1, %v1222_v16, 128 }
 0x1c0   :  { %v209_v19 = vshra.s32 %v206_v18, 16  ;;  %v208_v43 = vand.u32 65535, %v206_v18 }
 0x1c1   :  { %v201_v20 = vpop.xlane.xlu0 %200 }
 0x1c2   :  { %vm205_vm2 = vcmp.eq.f32.partialorder %v197_v14, %v201_v20  ;;  %v211_v21 = vcvt.s32.f32 %v209_v19  ;;  %v210_v46 = vcvt.s32.f32 %v208_v43  ;;  %v1099_v14 = vmov 1.0|1.0  }
 0x1c3   :  { %v207_v22 = vsel %vm205_vm2, %v1222_v16, 128  ;;  %vm407_vm2 = vcmask 130048  }
 0x1c4   :  { %212 = vmin.xlane.f32.xlu1 %v211_v21  ;;  %v223_v23 = vshra.s32 %v207_v22, 16  ;;  %v222_v44 = vand.u32 65535, %v207_v22 }
 0x1c6   :  { %v225_v24 = vcvt.s32.f32 %v223_v23  ;;  %v224_v49 = vcvt.s32.f32 %v222_v44 }
 0x1c8   :  { %226 = vmin.xlane.f32.xlu1 %v225_v24 }
 0x251   :  { %v213_v45 = vpop.xlane.xlu1 %212 }
 0x252   :  { %vm214_vm3 = vcmp.eq.f32.partialorder %v211_v21, %v213_v45  ;;  %v219_v62 = vcvt.f32.s32 %v213_v45  ;;  %v368_v21 = vld [vmem:[#allocation14] sm:$0x1] }
 0x253   :  { %v215_v47 = vsel %vm214_vm3, %v210_v46, inf  ;;  %vm92_vm3 = vcmask 0  }
 0x254   :  { %216 = vmin.xlane.f32.xlu0 %v215_v47  ;;  %v220_v0 = vshll.u32 %v219_v62, 16  ;;  %93 = vst.msk [vmem:[#allocation13] sm:$0x1] %vm92_vm3, %v1097_v57 }
 0x255   :  { %v227_v48 = vpop.xlane.xlu1 %226 }
 0x256   :  { %vm228_vm4 = vcmp.eq.f32.partialorder %v225_v24, %v227_v48  ;;  %v233_v1 = vcvt.f32.s32 %v227_v48 }
 0x257   :  { %v229_v50 = vsel %vm228_vm4, %v224_v49, inf }
 0x258   :  { %230 = vmin.xlane.f32.xlu1 %v229_v50  ;;  %516 = vadd.xlane.f32.xlu0 %v515_v60  ;;  %v234_v6 = vshll.u32 %v233_v1, 16 }
 0x25c   :  { %519 = vadd.xlane.f32.xlu1 %v518_v61 }
 0x2e1   :  { %v217_v63 = vpop.xlane.xlu0 %216 }
 0x2e2   :  { %v218_v2 = vcvt.f32.s32 %v217_v63 }
 0x2e4   :  { %v221_v3 = vadd.s32 %v220_v0, %v218_v2 }
 0x2e5   :  { %v231_v4 = vpop.xlane.xlu1 %230  ;;  %v1257_v35 = vpop.xlane.xlu0 %516 }
 0x2e6   :  { %v232_v8 = vcvt.f32.s32 %v231_v4  ;;  %vm236_vm6 = vcmp.eq.s32.totalorder %v1222_v16, %v221_v3  ;;  %615 = vst.msk [vmem:[#allocation11] sm:$0xff] %vm351_vm5, %v221_v3  ;;  %861 = vrsqrt.f32 %v1257_v35  ;;  %vm523_vm9 = vcmp.eq.f32.partialorder %v1257_v35, inf }
 0x2e7   :  { %788 = vmatprep.mubr.msk.f32.mxu1 %vm236_vm6, %v1098_v9  ;;  %v705_v11 = vsel %vm236_vm6, 1.0, %v1097_v57  ;;  %v526_v43 = vand.u32 2147483648, %v1257_v35  ;;  %vm525_vm11 = vcmp.eq.f32.partialorder %v1257_v35, 0.0 }
 0x2e8   :  { %v235_v10 = vadd.s32 %v234_v6, %v232_v8 }
 0x2e9   :  { %v1259_v36 = vpop.xlane.xlu1 %519 }
 0x2ea   :  { %vm237_vm7 = vcmp.eq.s32.totalorder %v1222_v16, %v235_v10  ;;  %616 = vst.msk [vmem:[#allocation11 + $0x8] sm:$0xff] %vm351_vm5, %v235_v10  ;;  %863 = vrsqrt.f32 %v1259_v36  ;;  %vm530_vm10 = vcmp.eq.f32.partialorder %v1259_v36, inf  ;;  %v533_v45 = vand.u32 2147483648, %v1259_v36 }
 0x2eb   :  { %v706_v12 = vsel %vm237_vm7, 1.0, %v1097_v57  ;;  %789 = vmatmul.mubr.msk.f32.vlgmr.msra.gmra.mrb[0].mxu1 %vm237_vm7, %v1098_v9  ;;  %vm841_vm8 = vmpackc.low %vm237_vm7, %vm236_vm6  ;;  %vm532_vm12 = vcmp.eq.f32.partialorder %v1259_v36, 0.0 }
 0x2ec   :  { %v242_v13 = vadd.f32 %v706_v12, %v705_v11  ;;  %842 = vmatprep.subr.msk.bf16.mxu0 %vm841_vm8, %v1099_v14 }
 0x2ed   :  { %844 = vmatpush3.bf16.msk.msra.mxu0 %vm841_vm8, %v1099_v14 }
 0x2ee   :  { %v243_v15 = vrot.slane %v242_v13, 4 }
 0x2f0   :  { %v244_v17 = vadd.f32 %v243_v15, %v242_v13  ;;  %v862_v37 = vpop.eup %861 }
 0x2f1   :  { %v522_v41 = vmul.f32 %v862_v37, %v1257_v35 }
 0x2f2   :  { %v245_v18 = vrot.slane %v244_v17, 2 }
 0x2f3   :  { %v524_v44 = vsel %vm523_vm9, %v1257_v35, %v522_v41 }
 0x2f4   :  { %v246_v19 = vadd.f32 %v245_v18, %v244_v17  ;;  %v864_v38 = vpop.eup %863  ;;  %v527_v47 = vsel %vm525_vm11, %v526_v43, %v524_v44 }
 0x2f5   :  { %v529_v42 = vmul.f32 %v864_v38, %v1259_v36  ;;  %v535_v51 = vadd.f32 1e-10, %v527_v47 }
 0x2f6   :  { %v247_v20 = vrot.slane %v246_v19, 1 }
 0x2f7   :  { %v531_v46 = vsel %vm530_vm10, %v1259_v36, %v529_v42 }
 0x2f8   :  { %v248_v22 = vadd.f32 %v247_v20, %v246_v19  ;;  %v534_v48 = vsel %vm532_vm12, %v533_v45, %v531_v46 }
 0x2f9   :  { %v536_v53 = vadd.f32 1e-10, %v534_v48 }
 0x2fa   :  { %v369_v16 = vadd.f32 %v368_v21, %v248_v22 }
 0x2fc   :  { %370 = vst [vmem:[#allocation14] sm:$0x1] %v369_v16 }
 0x3be   :  { %v1239_v23 = vpop.f32.mrb[0].mxu1 }
 0x3bf   :  { %v1241_v24 = vpop.f32.mrb[1].mxu1  ;;  %v542_v25 = vmul.f32 %v1239_v23, %v1239_v23  ;;  %v341_v29 = vsub.f32 %v1239_v23, %v1218_v7 }
 0x3c0   :  { %v340_v26 = vsub.f32 %v1241_v24, %v1214_v5  ;;  %v541_v27 = vmul.f32 %v1241_v24, %v1241_v24 }
 0x3c1   :  { %v546_v28 = vsel %vm105_vm0, %v542_v25, 0.0  ;;  %v343_v33 = vmul.f32 %v341_v29, %v341_v29 }
 0x3c2   :  { %v342_v30 = vmul.f32 %v340_v26, %v340_v26  ;;  %547 = vadd.xlane.f32.xlu1 %v546_v28  ;;  %v543_v31 = vsel %vm105_vm0, %v541_v27, 0.0 }
 0x3c3   :  { %544 = vadd.xlane.f32.xlu0 %v543_v31  ;;  %v347_v34 = vsel %vm105_vm0, %v343_v33, 0.0 }
 0x3c4   :  { %v344_v32 = vsel %vm105_vm0, %v342_v30, 0.0 }
 0x3c6   :  { %345 = vadd.xlane.f32.xlu1 %v344_v32 }
 0x3ca   :  { %348 = vadd.xlane.f32.xlu1 %v347_v34 }
 0x3f0   :  { %375 = vxpose.xlu0.b32.start [1/2] (short) (narrow) %v1214_v5, 32 }
 0x3f4   :  { %376 = vxpose.xlu0.b32.end [2/2] (short) (narrow) %v1218_v7, 32 }
 0x44f   :  { %v548_v39 = vpop.xlane.xlu1 %547 }
 0x450   :  { %865 = vrsqrt.f32 %v548_v39  ;;  %v545_v40 = vpop.xlane.xlu0 %544  ;;  %vm558_vm13 = vcmp.eq.f32.partialorder %v548_v39, inf  ;;  %v561_v54 = vand.u32 2147483648, %v548_v39  ;;  %vm560_vm14 = vcmp.eq.f32.partialorder %v548_v39, 0.0 }
 0x451   :  { %867 = vrsqrt.f32 %v545_v40  ;;  %vm551_vm15 = vcmp.eq.f32.partialorder %v545_v40, inf  ;;  %v554_v58 = vand.u32 2147483648, %v545_v40  ;;  %vm553_vm1 = vcmp.eq.f32.partialorder %v545_v40, 0.0 }
 0x452   :  { %869 = vrcp.f32 %v535_v51 }
 0x453   :  { %871 = vrcp.f32 %v536_v53  ;;  %v346_v10 = vpop.xlane.xlu1 %345 }
 0x454   :  { %v352_v16 = vsel %vm351_vm5, %v346_v10, 0.0 }
 0x457   :  { %v349_v18 = vpop.xlane.xlu1 %348 }
 0x458   :  { %v353_v20 = vsel %vm351_vm5, %v349_v18, 0.0 }
 0x45a   :  { %v866_v49 = vpop.eup %865 }
 0x45b   :  { %v868_v50 = vpop.eup %867  ;;  %v557_v52 = vmul.f32 %v866_v49, %v548_v39 }
 0x45c   :  { %v550_v55 = vmul.f32 %v868_v50, %v545_v40  ;;  %v1279_v0 = vpop.eup %869 }
 0x45d   :  { %v559_v56 = vsel %vm558_vm13, %v548_v39, %v557_v52  ;;  %v1281_v1 = vpop.eup %871  ;;  %v563_v6 = vmul.f32 %v1279_v0, %v1214_v5 }
 0x45e   :  { %v1273_v59 = vsel %vm560_vm14, %v561_v54, %v559_v56  ;;  %v552_v60 = vsel %vm551_vm15, %v545_v40, %v550_v55  ;;  %v564_v9 = vmul.f32 %v1281_v1, %v1218_v7 }
 0x45f   :  { %v566_v61 = vadd.f32 1e-10, %v1273_v59  ;;  %v1276_v62 = vsel %vm553_vm1, %v554_v58, %v552_v60 }
 0x460   :  { %v565_v63 = vadd.f32 1e-10, %v1276_v62 }
 0x461   :  { %873 = vrcp.f32 %v566_v61 }
 0x462   :  { %875 = vrcp.f32 %v565_v63 }
 0x46b   :  { %v874_v2 = vpop.eup %873 }
 0x46c   :  { %v876_v3 = vpop.eup %875  ;;  %v1284_v4 = vmul.f32 %v874_v2, %v1239_v23  ;;  %v354_v23 = vadd.f32 %v353_v20, %v352_v16 }
 0x46d   :  { %v1289_v8 = vmul.f32 %v876_v3, %v1241_v24 }
 0x46e   :  { %v574_v12 = vadd.f32 %v1284_v4, %v564_v9 }
 0x46f   :  { %v573_v11 = vadd.f32 %v1289_v8, %v563_v6 }
 0x470   :  { %v391_v13 = vpop.trf.xlu0  ;;  %v576_v17 = vmul.f32 %v574_v12, %v574_v12 }
 0x471   :  { %v575_v14 = vmul.f32 %v573_v11, %v573_v11  ;;  %795 = vmatprep.mubr.msk.f32.mxu0 %vm407_vm2, %v391_v13 }
 0x472   :  { %v580_v21 = vsel %vm105_vm0, %v576_v17, 0.0 }
 0x473   :  { %v577_v15 = vsel %vm105_vm0, %v575_v14, 0.0 }
 0x474   :  { %578 = vadd.xlane.f32.xlu1 %v577_v15  ;;  %v392_v19 = vpop.trf.xlu0 }
 0x475   :  { %796 = vmatmul.mubr.msk.f32.vlgmr.msra.gmra.mrb[2].mxu0 %vm407_vm2, %v392_v19 }
 0x478   :  { %581 = vadd.xlane.f32.xlu1 %v580_v21  ;;  %v393_v22 = vpop.trf.xlu0 }
 0x479   :  { %798 = vmatprep.mubr.msk.f32.mxu0 %vm407_vm2, %v393_v22 }
 0x47c   :  { %355 = vadd.xlane.f32.xlu1 %v354_v23  ;;  %v394_v24 = vpop.trf.xlu0 }
 0x47d   :  { %799 = vmatmul.mubr.msk.f32.gmra.mrb[4].mxu0 %vm407_vm2, %v394_v24 }
 0x501   :  { %v579_v25 = vpop.xlane.xlu1 %578 }
 0x502   :  { %877 = vrsqrt.f32 %v579_v25 }
 0x505   :  { %v582_v26 = vpop.xlane.xlu1 %581 }
 0x506   :  { %879 = vrsqrt.f32 %v582_v26 }
 0x509   :  { %v356_v27 = vpop.xlane.xlu1 %355 }
 0x50a   :  { %v357_v28 = vrot.slane %v356_v27, 4 }
 0x50c   :  { %v878_v29 = vpop.eup %877  ;;  %v358_v30 = vadd.f32 %v357_v28, %v356_v27 }
 0x50d   :  { %v1305_v31 = vmul.f32 %v878_v29, %v573_v11 }
 0x50e   :  { %v359_v32 = vrot.slane %v358_v30, 2 }
 0x50f   :  { %v587_v33 = vmul.f32 %v1305_v31, %v1214_v5 }
 0x510   :  { %v880_v34 = vpop.eup %879  ;;  %v360_v37 = vadd.f32 %v359_v32, %v358_v30 }
 0x511   :  { %v589_v38 = vsel %vm105_vm0, %v587_v33, 0.0  ;;  %v1310_v39 = vmul.f32 %v880_v34, %v574_v12 }
 0x512   :  { %590 = vadd.xlane.f32.xlu1 %v589_v38  ;;  %v361_v57 = vrot.slane %v360_v37, 1 }
 0x513   :  { %v588_v40 = vmul.f32 %v1310_v39, %v1218_v7 }
 0x514   :  { %v362_v41 = vadd.f32 %v361_v57, %v360_v37 }
 0x515   :  { %v592_v42 = vsel %vm105_vm0, %v588_v40, 0.0 }
 0x516   :  { %593 = vadd.xlane.f32.xlu1 %v592_v42  ;;  %845 = vpush %v362_v41 }
 0x517   :  { %980 = shalt.err (!%p977_p8)
}
 0x518   :  { %s981_s19 = scalar_lea.hbm %s1406_s5, 256 }
 0x519   :  { %p982_p9 = scmp.ne.s32.totalorder %s1406_s5, %s981_s19  ;;  %p985_p10 = scmp.lt.u32.totalorder %s981_s19, %s1406_s5 }
 0x51b   :  { %p987_p11 = pnand %p985_p10, %p982_p9 }
 0x51d   :  { %990 = shalt.err (!%p987_p11)
}
 0x51e   :  { %648 = dma.vmem_to_hbm [thread:$0]  %s643_s11, 256, %s1406_s5, [#allocation12], %s1093_s17, %s1093_s17, %s1094_s18  }
 0x51f   :  { %s991_s24 = scalar_lea.vmem %s666_s13, 16  ;;  %s995_s25 = scalar_lea.vmem %s666_s13, 32 }
 0x520   :  { %p992_p12 = scmp.ne.s32.totalorder %s666_s13, %s991_s24  ;;  %p996_p13 = scmp.lt.s32.totalorder %s666_s13, %s666_s13 }
 0x521   :  { %p997_p0 = scmp.lt.s32.totalorder %s995_s25, %s991_s24 }
 0x523   :  { %p998_p1 = por %p997_p0, %p996_p13 }
 0x525   :  { %p999_p2 = pnand %p998_p1, %p992_p12 }
 0x527   :  { %1002 = shalt.err (!%p999_p2)
}
 0x528   :  { %s1003_s29 = scalar_lea.hbm %s1408_s7, 16 }
 0x529   :  { %p1004_p3 = scmp.ne.s32.totalorder %s1408_s7, %s1003_s29  ;;  %p1007_p4 = scmp.lt.u32.totalorder %s1003_s29, %s1408_s7 }
 0x52b   :  { %p1009_p5 = pnand %p1007_p4, %p1004_p3 }
 0x52d   :  { %1012 = shalt.err (!%p1009_p5)
}
 0x52e   :  { %668 = dma.vmem_to_hbm [thread:$0]  %s666_s13, 16, %s1408_s7, [#allocation15]   ;;  %v350_v43 = vld [vmem:[#allocation13] sm:$0x1] }
 0x52f   :  { %s1102_s3 = smov [#allocation13]  }
 0x530   :  { %s655_s11 = sshll.u32 %s1102_s3, 4  ;;  %s656_s11 = int_to_ptr.vmem [resolvable:$true] %s655_s11 }
 0x531   :  { %s1013_s14 = scalar_lea.vmem %s656_s11, 16  ;;  %s1017_s15 = scalar_lea.vmem %s656_s11, 32 }
 0x532   :  { %p1014_p6 = scmp.ne.s32.totalorder %s656_s11, %s1013_s14  ;;  %p1018_p7 = scmp.lt.s32.totalorder %s656_s11, %s656_s11 }
 0x533   :  { %p1019_p8 = scmp.lt.s32.totalorder %s1017_s15, %s1013_s14 }
 0x535   :  { %p1020_p9 = por %p1019_p8, %p1018_p7 }
 0x537   :  { %p1021_p10 = pnand %p1020_p9, %p1014_p6 }
 0x547   :  { %s846_s12 = spop %845 }
 0x548   :  { %v364_v44 = vstv %s846_s12  ;;  %v797_v45 = vpop.f32.mrb[2].mxu0 }
 0x549   :  { %v365_v46 = vadd.f32 %v364_v44, %v350_v43  ;;  %v486_v47 = vpop.f32.mrb[3].mxu0  ;;  %510 = vst [vmem:[#allocation16 + $0x8] sm:$0xff] %v797_v45 }
 0x54a   :  { %509 = vst [vmem:[#allocation16] sm:$0xff] %v486_v47 }
 0x54b   :  { %367 = vst.msk [vmem:[#allocation13] sm:$0x1] %vm92_vm3, %v365_v46 }
 0x54c   :  { %1024 = shalt.err (!%p1021_p10)
}
 0x54d   :  { %s1025_s16 = scalar_lea.hbm %s1407_s6, 16 }
 0x54e   :  { %p1026_p11 = scmp.ne.s32.totalorder %s1407_s6, %s1025_s16  ;;  %p1029_p12 = scmp.lt.u32.totalorder %s1025_s16, %s1407_s6 }
 0x550   :  { %p1031_p13 = pnand %p1029_p12, %p1026_p11 }
 0x552   :  { %1034 = shalt.err (!%p1031_p13)
}
 0x553   :  { %658 = dma.vmem_to_hbm [thread:$0]  %s656_s11, 16, %s1407_s6, [#allocation12]   ;;  %v800_v48 = vpop.f32.mrb[4].mxu0 }
 0x554   :  { %s1103_s23 = smov [#allocation16]   ;;  %v496_v49 = vpop.f32.mrb[5].mxu0  ;;  %512 = vst [vmem:[#allocation16 + $0x18] sm:$0xff] %v800_v48 }
 0x555   :  { %s674_s24 = sshll.u32 %s1103_s23, 4  ;;  %511 = vst [vmem:[#allocation16 + $0x10] sm:$0xff] %v496_v49  ;;  %s675_s24 = int_to_ptr.vmem [resolvable:$true] %s674_s24 }
 0x556   :  { %s1035_s25 = scalar_lea.vmem %s675_s24, 512  ;;  %p1040_p1 = scmp.lt.s32.totalorder %s675_s24, %s675_s24 }
 0x557   :  { %p1036_p0 = scmp.ne.s32.totalorder %s675_s24, %s1035_s25  ;;  %p1041_p2 = scmp.lt.s32.totalorder %s1035_s25, %s1035_s25 }
 0x559   :  { %p1042_p3 = por %p1041_p2, %p1040_p1 }
 0x55b   :  { %p1043_p4 = pnand %p1042_p3, %p1036_p0 }
 0x55d   :  { %1046 = shalt.err (!%p1043_p4)
}
 0x55e   :  { %s1047_s29 = scalar_lea.hbm %s1409_s8, 512 }
 0x55f   :  { %p1048_p5 = scmp.ne.s32.totalorder %s1409_s8, %s1047_s29  ;;  %p1051_p6 = scmp.lt.u32.totalorder %s1047_s29, %s1409_s8 }
 0x561   :  { %p1053_p7 = pnand %p1051_p6, %p1048_p5 }
 0x563   :  { %1056 = shalt.err (!%p1053_p7)
}
 0x564   :  { %680 = dma.vmem_to_hbm [thread:$0]  %s675_s24, 512, %s1409_s8, [#allocation15], %s1093_s17, %s1093_s17, %s1094_s18   ;;  %v595_v50 = vmul.f32 %v1279_v0, %v1257_v35  ;;  %v596_v55 = vmul.f32 %v1281_v1, %v1259_v36  ;;  %v609_v35 = vmul.f32 %v1279_v0, %v1276_v62  ;;  %v610_v36 = vmul.f32 %v1281_v1, %v1273_v59 }
 0x565   :  { %s1104_s8 = smov [#allocation10]  }
 0x566   :  { %v603_v53 = vmul.f32 2.0, %v595_v50  ;;  %v604_v2 = vmul.f32 2.0, %v596_v55  ;;  %s626_s10 = sshll.u32 %s1104_s8, 4  ;;  %s627_s10 = int_to_ptr.vmem [resolvable:$true] %s626_s10 }
 0x567   :  { %s1057_s3 = scalar_lea.vmem %s627_s10, 256  ;;  %p1062_p9 = scmp.lt.s32.totalorder %s627_s10, %s627_s10 }
 0x568   :  { %v605_v58 = vmul.f32 %v603_v53, %v1289_v8  ;;  %v606_v6 = vmul.f32 %v604_v2, %v1284_v4  ;;  %p1058_p8 = scmp.ne.s32.totalorder %s627_s10, %s1057_s3  ;;  %p1063_p10 = scmp.lt.s32.totalorder %s1057_s3, %s1057_s3 }
 0x56a   :  { %p1064_p11 = por %p1063_p10, %p1062_p9 }
 0x56c   :  { %p1065_p12 = pnand %p1064_p11, %p1058_p8 }
 0x59f   :  { %v591_v51 = vpop.xlane.xlu1 %590 }
 0x5a0   :  { %v597_v52 = vmul.f32 2.0, %v591_v51 }
 0x5a2   :  { %v599_v54 = vmul.f32 %v597_v52, %v1305_v31 }
 0x5a3   :  { %v594_v56 = vpop.xlane.xlu1 %593 }
 0x5a4   :  { %v601_v60 = vsub.f32 %v1214_v5, %v599_v54  ;;  %v598_v61 = vmul.f32 2.0, %v594_v56 }
 0x5a6   :  { %v607_v63 = vadd.f32 %v605_v58, %v601_v60  ;;  %v600_v3 = vmul.f32 %v598_v61, %v1310_v39 }
 0x5a8   :  { %v602_v9 = vsub.f32 %v1218_v7, %v600_v3  ;;  %v611_v10 = vmul.f32 %v609_v35, %v607_v63 }
 0x5aa   :  { %v608_v8 = vadd.f32 %v606_v6, %v602_v9  ;;  %613 = vst.msk [vmem:[#allocation10] sm:$0xff] %vm105_vm0, %v611_v10 }
 0x5ac   :  { %v612_v5 = vmul.f32 %v610_v36, %v608_v8 }
 0x5ae   :  { %614 = vst.msk [vmem:[#allocation10 + $0x8] sm:$0xff] %vm105_vm0, %v612_v5 }
 0x5af   :  { %1068 = shalt.err (!%p1065_p12)
}
 0x5b0   :  { %s1069_s14 = scalar_lea.hbm %s1405_s4, 256 }
 0x5b1   :  { %p1070_p13 = scmp.ne.s32.totalorder %s1405_s4, %s1069_s14  ;;  %p1073_p0 = scmp.lt.u32.totalorder %s1069_s14, %s1405_s4 }
 0x5b3   :  { %p1075_p1 = pnand %p1073_p0, %p1070_p13 }
 0x5b5   :  { %1078 = shalt.err (!%p1075_p1)
}
 0x5b6   :  { %632 = dma.vmem_to_hbm [thread:$0]  %s627_s10, 256, %s1405_s4, [#allocation4], %s1093_s17, %s1093_s17, %s1094_s18  }
 0x5b7   :  { %1085 = dma.done.wait [#allocation4], 256  }
 0x5b8   :  { %1086 = vsyncadd [#allocation4], 4294967040 }
 0x5b9   :  { %1087 = dma.done.wait [#allocation12], 272  }
 0x5ba   :  { %1088 = vsyncadd [#allocation12], 4294967024 }
 0x5bb   :  { %1089 = dma.done.wait [#allocation15], 528  }
 0x5bc   :  { %1090 = vsyncadd [#allocation15], 4294966768 }
 0x5bd   :  { %696 = vsyncpa [#allocation3], 1 }
 0x5be   :  { %697 = vsyncpa [#allocation6], 1 }
 0x5bf   :  { %698 = vsyncpa [#allocation9], 1 }
 0x5c0   :  { %699 = vsyncpa [#allocation4], 1 }
 0x5c1   :  { %700 = vsyncpa [#allocation12], 1 }
 0x5c2   :  { %701 = vsyncpa [#allocation15], 1 }

</bundles_post_ra>
